<compile_context>
chip_gen: v7x
topology: tpu7x:2x2x1
jax: 0.10.0
libtpu: 0.0.40
codegen_flags: <defaults>
</compile_context>

<pallas_src>
import jax
import jax.numpy as jnp
from jax import lax
from jax.experimental import pallas as pl
from jax.experimental.pallas import tpu as pltpu

_LANE = 128


def _linear_relu_kernel(x_ref, w_ref, b_ref, o_ref):
    # y = relu(x @ W^T + b); accumulate in f32, cast once at the store.
    y = jnp.dot(
        x_ref[...],
        w_ref[...],
        preferred_element_type=jnp.float32,
        precision=lax.Precision.HIGHEST,
    )
    o_ref[...] = jnp.maximum(y + b_ref[...], 0.0).astype(o_ref.dtype)


def _round_up(v, mult):
    return -(-v // mult) * mult


def _tpu_vmem_and_cores():
    """Best-effort query of per-core VMEM capacity and TensorCore count."""
    vmem = 128 << 20
    try:
        info = pltpu.get_tpu_info()
        vmem = int(getattr(info, "vmem_capacity_bytes", vmem))
    except Exception:
        pass
    # Heuristic: 64 MiB per-TC VMEM => v7x-class chip with 2 TensorCores
    # sharing the parallel grid axis; v5e/v6e (128 MiB) have a single TC.
    num_cores = 2 if vmem <= (64 << 20) else 1
    return vmem, num_cores


def _choose_tiling(m, d_in, d_out, x_dtype, out_dtype, target=8192):
    """Pick (row_tile, vmem_limit_bytes). Row tile is as large as the VMEM
    budget and `target` allow (amortize per-step overhead), a multiple of the
    sublane minimum, and split across >=2 (even-count) blocks only on chips
    that actually have 2 TensorCores."""
    vmem, num_cores = _tpu_vmem_and_cores()
    # Declared scoped-VMEM budget: half of physical per-core VMEM
    # (=> 32 MiB on v7x, 64 MiB on v5e/v6e), always within physical limits.
    budget = min(vmem // 2, 64 << 20)

    xi = jnp.dtype(x_dtype).itemsize
    oi = jnp.dtype(out_dtype).itemsize
    sub = 8 * max(1, 4 // xi)  # min sublane tile: 8 rows for f32, 16 for bf16

    # Double-buffered per-row VMEM bytes with lane padding (103->128, 200->256).
    per_row = 2 * (_round_up(d_in, _LANE) * xi + _round_up(d_out, _LANE) * oi)
    # Resident W^T + bias (padded) plus slack for compiler-internal scratch.
    resident = (
        _round_up(d_in, sub) * _round_up(d_out, _LANE) * xi
        + sub * _round_up(d_out, _LANE) * oi
        + (1 << 20)
    )
    tm_cap = max(sub, ((budget - resident) // per_row) // sub * sub)
    target = max(sub, min(target, tm_cap))

    if m <= sub:
        tm = m  # single full block (full array extent is always layout-legal)
    elif num_cores == 1:
        # Single TensorCore: splitting small M only adds grid-step overhead.
        tm = m if m <= target else target
    else:
        # Two TensorCores: want >= 2 blocks, and an even block count for
        # large M so neither core idles on a tail tile.
        if m <= 2 * target:
            tm = min(_round_up(-(-m // 2), sub), m)
        else:
            nb = pl.cdiv(m, target)
            if nb % 2:
                nb += 1
            tm = min(_round_up(-(-m // nb), sub), target)
    return tm, budget


def prepare_params(w, b):
    """One-time parameter prep (hoisted out of the per-call path):
    W^T as (d_in, d_out) and bias as a (1, d_out) row."""
    return w.T, b.reshape(1, -1)


def teacher_front_apply(x, wt, br, *, tm=None):
    """x: [..., d_in]; wt: [d_in, d_out]; br: [1, d_out] -> relu(x @ wt + br)."""
    orig_shape = x.shape
    d_in = orig_shape[-1]
    d_out = wt.shape[1]
    m = 1
    for s in orig_shape[:-1]:
        m *= s

    x2d = x.reshape(m, d_in)
    out_dtype = x.dtype

    auto_tm, vmem_limit = _choose_tiling(m, d_in, d_out, x.dtype, out_dtype)
    if tm is None:
        tm = auto_tm

    grid = (pl.cdiv(m, tm),)

    cost = pl.CostEstimate(
        flops=2 * m * d_in * d_out,
        transcendentals=0,
        bytes_accessed=(m * d_in + m * d_out) * jnp.dtype(x.dtype).itemsize
        + (d_in * d_out + d_out) * jnp.dtype(wt.dtype).itemsize,
    )

    out = pl.pallas_call(
        _linear_relu_kernel,
        out_shape=jax.ShapeDtypeStruct((m, d_out), out_dtype),
        grid_spec=pltpu.PrefetchScalarGridSpec(
            num_scalar_prefetch=0,
            grid=grid,
            in_specs=[
                pl.BlockSpec((tm, d_in), lambda i: (i, 0)),     # streamed x rows
                pl.BlockSpec((d_in, d_out), lambda i: (0, 0)),  # W^T (resident)
                pl.BlockSpec((1, d_out), lambda i: (0, 0)),     # bias (resident)
            ],
            out_specs=pl.BlockSpec((tm, d_out), lambda i: (i, 0)),
        ),
        compiler_params=pltpu.CompilerParams(
            dimension_semantics=("parallel",),
            vmem_limit_bytes=int(vmem_limit),
        ),
        cost_estimate=cost,
    )(x2d, wt, br)
    return out.reshape(*orig_shape[:-1], d_out)


def teacher_front_forward(x, w, b, *, tm=None):
    """Convenience wrapper: x: [..., 103]; w: [200, 103]; b: [200]."""
    wt, br = prepare_params(w, b)
    return teacher_front_apply(x, wt, br, tm=tm)


def _reference(x, w, b):
    y = jnp.einsum("...d,od->...o", x, w, precision=lax.Precision.HIGHEST) + b
    return jnp.maximum(y, 0.0)


if __name__ == "__main__":
    D_IN, D_OUT = 103, 200
    B, S = 2, 8

    key = jax.random.PRNGKey(0)
    kx, kx2, kw, kb = jax.random.split(key, 4)

    # PyTorch-like init: uniform +- 1/sqrt(fan_in).
    bound = 1.0 / (D_IN ** 0.5)
    x = jax.random.normal(kx, (B, S, D_IN), dtype=jnp.float32)
    w = jax.random.uniform(kw, (D_OUT, D_IN), jnp.float32, -bound, bound)
    b = jax.random.uniform(kb, (D_OUT,), jnp.float32, -bound, bound)

    y = teacher_front_forward(x, w, b)
    y = jax.block_until_ready(y)
    y_ref = _reference(x, w, b)
    assert y.shape == (B, S, D_OUT)
    assert jnp.allclose(y, y_ref, atol=1e-4, rtol=1e-4)

    # Second shape exercising a partial (masked) last row-block.
    x2 = jax.random.normal(kx2, (4, 25, D_IN), dtype=jnp.float32)
    y2 = jax.block_until_ready(teacher_front_forward(x2, w, b))
    y2_ref = _reference(x2, w, b)
    assert y2.shape == (4, 25, D_OUT)
    assert jnp.allclose(y2, y2_ref, atol=1e-4, rtol=1e-4)

    print("KERNEL_OK")
</pallas_src>

<mosaic_0001>
module attributes {stable_mosaic.version = 11 : i64} {
  func.func @_linear_relu_kernel(%arg0: i32, %arg1: memref<16x103xf32, #tpu.memory_space<vmem>>, %arg2: memref<103x200xf32, #tpu.memory_space<vmem>>, %arg3: memref<1x200xf32, #tpu.memory_space<vmem>>, %arg4: memref<16x200xf32, #tpu.memory_space<vmem>>) attributes {dimension_semantics = [#tpu.dimension_semantics<parallel>], iteration_bounds = array<i64: 1>, scalar_prefetch = 0 : i64, scratch_operands = 0 : i64, tpu.core_type = #tpu.core_type<tc>, window_params = [{transform_indices = @transform_0, window_bounds = array<i64: 16, 103>}, {pipeline_mode = #tpu.pipeline_mode<synchronous>, transform_indices = @transform_1, window_bounds = array<i64: 103, 200>}, {pipeline_mode = #tpu.pipeline_mode<synchronous>, transform_indices = @transform_2, window_bounds = array<i64: 1, 200>}, {transform_indices = @transform_3, window_bounds = array<i64: 16, 200>}]} {
    %c0 = arith.constant 0 : index
    %c0_0 = arith.constant 0 : index
    %0 = vector.load %arg1[%c0, %c0_0] : memref<16x103xf32, #tpu.memory_space<vmem>>, vector<16x103xf32>
    %c0_1 = arith.constant 0 : index
    %c0_2 = arith.constant 0 : index
    %1 = vector.load %arg2[%c0_1, %c0_2] : memref<103x200xf32, #tpu.memory_space<vmem>>, vector<103x200xf32>
    %cst = arith.constant dense<0.000000e+00> : vector<16x200xf32>
    %2 = tpu.matmul %0, %1, %cst {dimension_numbers = #tpu.dot_dimension_numbers<[1], [0], [0], [1], [0, 0, 1, 1], [], []>, precision = #tpu.contract_precision<fp32>} : vector<16x103xf32>, vector<103x200xf32>, vector<16x200xf32> -> vector<16x200xf32>
    %c0_3 = arith.constant 0 : index
    %c0_4 = arith.constant 0 : index
    %3 = vector.load %arg3[%c0_3, %c0_4] : memref<1x200xf32, #tpu.memory_space<vmem>>, vector<1x200xf32>
    %4 = vector.broadcast %3 : vector<1x200xf32> to vector<16x200xf32>
    %5 = arith.addf %2, %4 : vector<16x200xf32>
    %cst_5 = arith.constant 0.000000e+00 : f32
    %6 = vector.broadcast %cst_5 : f32 to vector<16x200xf32>
    %7 = arith.maximumf %5, %6 : vector<16x200xf32>
    %c0_6 = arith.constant 0 : index
    %c0_7 = arith.constant 0 : index
    %8 = vector.load %arg4[%c0_6, %c0_7] : memref<16x200xf32, #tpu.memory_space<vmem>>, vector<16x200xf32>
    tpu.vector_store %arg4[%c0_6, %c0_7], %7 {strides = array<i32>} : memref<16x200xf32, #tpu.memory_space<vmem>>, vector<16x200xf32>,
    return
  }
  func.func @transform_0(%arg0: i32) -> (i32, i32) {
    %c0_i32 = arith.constant 0 : i32
    %c0_i32_0 = arith.constant 0 : i32
    return %arg0, %c0_i32 : i32, i32
  }
  func.func @transform_1(%arg0: i32) -> (i32, i32) {
    %c0_i32 = arith.constant 0 : i32
    %c0_i32_0 = arith.constant 0 : i32
    %c0_i32_1 = arith.constant 0 : i32
    return %c0_i32, %c0_i32_0 : i32, i32
  }
  func.func @transform_2(%arg0: i32) -> (i32, i32) {
    %c0_i32 = arith.constant 0 : i32
    %c0_i32_0 = arith.constant 0 : i32
    %c0_i32_1 = arith.constant 0 : i32
    return %c0_i32, %c0_i32_0 : i32, i32
  }
  func.func @transform_3(%arg0: i32) -> (i32, i32) {
    %c0_i32 = arith.constant 0 : i32
    %c0_i32_0 = arith.constant 0 : i32
    return %arg0, %c0_i32 : i32, i32
  }
}

</mosaic_0001>

<bundles_post_ra>
// kernel: tpu_custom_call.1
= control target key start
LH: loop header
LB: loop body
LE: loop exit
PB: predicated region body
PF: predicated region fallthrough
CT: control target
= control target key end

     0   :  { %8 = vsyncpa [#allocation3], 0  ;;  %s1561_s0 = inlined_call_operand.hbm [shape: f32[16,103], index: 0, kind: input, shape index: {}]   ;;  %s1562_s1 = inlined_call_operand.hbm [shape: f32[103,200], index: 1, kind: input, shape index: {}]   ;;  %s1563_s2 = inlined_call_operand.hbm [shape: f32[1,200], index: 2, kind: input, shape index: {}]   ;;  %s1564_s3 = inlined_call_operand.hbm [shape: f32[16,200], index: 3, kind: output, shape index: {}]  }
   0x1   :  { %9 = vsyncpa [#allocation6], 0 }
   0x2   :  { %10 = vsyncpa [#allocation4], 0  ;;  %s1232_s12 = smov [#allocation5]   ;;  %s1138_s16 = scalar_lea.hbm %s1562_s1, 3328 }
   0x3   :  { %s28_s13 = sshll.u32 %s1232_s12, 4  ;;  %p1139_p0 = scmp.ne.s32.totalorder %s1562_s1, %s1138_s16  ;;  %s29_s13 = int_to_ptr.vmem [resolvable:$true] %s28_s13 }
   0x4   :  { %p1142_p1 = scmp.lt.u32.totalorder %s1138_s16, %s1562_s1 }
   0x6   :  { %p1144_p2 = pnand %p1142_p1, %p1139_p0 }
   0x8   :  { %1147 = shalt.err (!%p1144_p2)
}
   0x9   :  { %s1148_s21 = scalar_lea.vmem %s29_s13, 3328  ;;  %p1153_p4 = scmp.lt.s32.totalorder %s29_s13, %s29_s13 }
   0xa   :  { %p1149_p3 = scmp.ne.s32.totalorder %s29_s13, %s1148_s21  ;;  %p1154_p5 = scmp.lt.s32.totalorder %s1148_s21, %s1148_s21 }
   0xc   :  { %p1155_p6 = por %p1154_p5, %p1153_p4 }
   0xe   :  { %p1156_p7 = pnand %p1155_p6, %p1149_p3 }
  0x10   :  { %1159 = shalt.err (!%p1156_p7)
}
  0x11   :  { %s1233_s22 = smov 256   ;;  %s1234_s23 = smov 16  }
  0x12   :  { %34 = dma.hbm_to_vmem [thread:$0]  %s1562_s1, 3328, %s29_s13, [#allocation6], %s1233_s22, %s1233_s22, %s1234_s23  }
  0x13   :  { %s1235_s26 = smov [#allocation2]   ;;  %s1160_s30 = scalar_lea.hbm %s1561_s0, 256 }
  0x14   :  { %s16_s27 = sshll.u32 %s1235_s26, 4  ;;  %p1161_p8 = scmp.ne.s32.totalorder %s1561_s0, %s1160_s30  ;;  %s17_s27 = int_to_ptr.vmem [resolvable:$true] %s16_s27 }
  0x15   :  { %p1164_p9 = scmp.lt.u32.totalorder %s1160_s30, %s1561_s0 }
  0x17   :  { %p1166_p10 = pnand %p1164_p9, %p1161_p8 }
  0x19   :  { %1169 = shalt.err (!%p1166_p10)
}
  0x1a   :  { %s1170_s8 = scalar_lea.vmem %s17_s27, 256  ;;  %p1175_p12 = scmp.lt.s32.totalorder %s17_s27, %s17_s27 }
  0x1b   :  { %p1171_p11 = scmp.ne.s32.totalorder %s17_s27, %s1170_s8  ;;  %p1176_p13 = scmp.lt.s32.totalorder %s1170_s8, %s1170_s8 }
  0x1d   :  { %p1177_p0 = por %p1176_p13, %p1175_p12 }
  0x1f   :  { %p1178_p1 = pnand %p1177_p0, %p1171_p11 }
  0x21   :  { %1181 = shalt.err (!%p1178_p1)
}
  0x22   :  { %s1236_s1 = smov 128   ;;  %s1237_s9 = smov 8  }
  0x23   :  { %22 = dma.hbm_to_vmem [thread:$0]  %s1561_s0, 256, %s17_s27, [#allocation3], %s1236_s1, %s1236_s1, %s1237_s9  }
  0x24   :  { %s1238_s12 = smov [#allocation7]   ;;  %s1182_s16 = scalar_lea.hbm %s1563_s2, 32 }
  0x25   :  { %s41_s13 = sshll.u32 %s1238_s12, 4  ;;  %p1183_p2 = scmp.ne.s32.totalorder %s1563_s2, %s1182_s16  ;;  %s42_s13 = int_to_ptr.vmem [resolvable:$true] %s41_s13 }
  0x26   :  { %p1186_p3 = scmp.lt.u32.totalorder %s1182_s16, %s1563_s2 }
  0x28   :  { %p1188_p4 = pnand %p1186_p3, %p1183_p2 }
  0x2a   :  { %1191 = shalt.err (!%p1188_p4)
}
  0x2b   :  { %s1192_s21 = scalar_lea.vmem %s42_s13, 32  ;;  %p1197_p6 = scmp.lt.s32.totalorder %s42_s13, %s42_s13 }
  0x2c   :  { %p1193_p5 = scmp.ne.s32.totalorder %s42_s13, %s1192_s21  ;;  %p1198_p7 = scmp.lt.s32.totalorder %s1192_s21, %s1192_s21 }
  0x2e   :  { %p1199_p8 = por %p1198_p7, %p1197_p6 }
  0x30   :  { %p1200_p9 = pnand %p1199_p8, %p1193_p5 }
  0x32   :  { %1203 = shalt.err (!%p1200_p9)
}
  0x33   :  { %44 = dma.hbm_to_vmem [thread:$0]  %s1563_s2, 32, %s42_s13, [#allocation6]  }
  0x34   :  { %1226 = dma.done.wait [#allocation3], 256  }
  0x35   :  { %1227 = vsyncadd [#allocation3], 4294967040 }
  0x36   :  { %1228 = dma.done.wait [#allocation6], 3360  }
  0x37   :  { %1229 = vsyncadd [#allocation6], 4294963936  ;;  %v1565_v0 = vmov 0.0   ;;  %v57_v1 = vld [vmem:[#allocation5 + $0x8] sm:$0xff]  ;;  %v59_v2 = vld [vmem:[#allocation5 + $0x18] sm:$0xff]  ;;  %vm101_vm0 = vcmask 1046528  }
  0x38   :  { %198 = vmatprep.mubr.f32.mxu1 %v1565_v0  ;;  %653 = vmatprep.mubr.f32.mxu0 %v1565_v0  ;;  %v56_v3 = vld [vmem:[#allocation5] sm:$0xff]  ;;  %v108_v4 = vand.u32 4294901760, %v57_v1  ;;  %v112_v5 = vand.u32 4294901760, %v59_v2  ;;  %v58_v6 = vld [vmem:[#allocation5 + $0x10] sm:$0xff]  ;;  %v61_v8 = vld [vmem:[#allocation5 + $0x28] sm:$0xff]  ;;  %vm94_vm1 = vcmask 842752  }
  0x39   :  { %v110_v7 = vand.u32 4294901760, %v56_v3  ;;  %v63_v9 = vld [vmem:[#allocation5 + $0x38] sm:$0xff]  ;;  %v114_v10 = vand.u32 4294901760, %v58_v6  ;;  %v116_v11 = vand.u32 4294901760, %v61_v8  ;;  %v60_v13 = vld [vmem:[#allocation5 + $0x20] sm:$0xff]  ;;  %v62_v14 = vld [vmem:[#allocation5 + $0x30] sm:$0xff] }
  0x3a   :  { %v120_v12 = vand.u32 4294901760, %v63_v9  ;;  %v65_v15 = vld [vmem:[#allocation5 + $0x48] sm:$0xff]  ;;  %v1302_v16 = vpack.c.bf16 %v112_v5, %v108_v4  ;;  %v1304_v17 = vsub.f32 %v57_v1, %v108_v4  ;;  %v1306_v18 = vsub.f32 %v59_v2, %v112_v5  ;;  %v67_v19 = vld [vmem:[#allocation5 + $0x58] sm:$0xff]  ;;  %v64_v20 = vld [vmem:[#allocation5 + $0x40] sm:$0xff]  ;;  %s1240_s2 = smov [#allocation8]  }
  0x3b   :  { %v66_v21 = vld [vmem:[#allocation5 + $0x50] sm:$0xff]  ;;  %v1308_v22 = vpack.c.bf16 %v114_v10, %v110_v7  ;;  %v1310_v23 = vsub.f32 %v56_v3, %v110_v7  ;;  %v1312_v24 = vsub.f32 %v58_v6, %v114_v10  ;;  %v69_v26 = vld [vmem:[#allocation5 + $0x68] sm:$0xff]  ;;  %v71_v27 = vld [vmem:[#allocation5 + $0x78] sm:$0xff]  ;;  %v1318_v28 = vsub.f32 %v61_v8, %v116_v11  ;;  %s948_s25 = sshll.u32 %s1240_s2, 4  ;;  %s949_s25 = int_to_ptr.vmem [resolvable:$true] %s948_s25 }
  0x3c   :  { %v1314_v25 = vpack.c.bf16 %v120_v12, %v116_v11  ;;  %962 = vmatprep.subr.bf16.mxu1 %v1302_v16  ;;  %1034 = vmatprep.subr.bf16.mxu0 %v1302_v16  ;;  %v118_v29 = vand.u32 4294901760, %v60_v13  ;;  %v122_v30 = vand.u32 4294901760, %v62_v14  ;;  %v124_v31 = vand.u32 4294901760, %v65_v15  ;;  %v68_v40 = vld [vmem:[#allocation5 + $0x60] sm:$0xff]  ;;  %v70_v41 = vld [vmem:[#allocation5 + $0x70] sm:$0xff]  ;;  %v73_v42 = vld [vmem:[#allocation5 + $0x88] sm:$0xff]  ;;  %p1209_p11 = scmp.lt.s32.totalorder %s949_s25, %s949_s25 }
  0x3d   :  { %964 = vmatpush1.bf16.msra.mxu1 %v1308_v22  ;;  %1036 = vmatpush1.bf16.msra.mxu0 %v1308_v22  ;;  %v128_v32 = vand.u32 4294901760, %v67_v19  ;;  %v126_v33 = vand.u32 4294901760, %v64_v20  ;;  %v130_v34 = vand.u32 4294901760, %v66_v21  ;;  %v132_v35 = vand.u32 4294901760, %v69_v26  ;;  %v75_v47 = vld [vmem:[#allocation5 + $0x98] sm:$0xff]  ;;  %v72_v48 = vld [vmem:[#allocation5 + $0x80] sm:$0xff] }
  0x3e   :  { %966 = vmatprep.subr.bf16.mxu1 %v1314_v25  ;;  %v1323_v36 = vsub.f32 %v63_v9, %v120_v12  ;;  %1038 = vmatprep.subr.bf16.mxu0 %v1314_v25  ;;  %v1326_v37 = vpack.c.bf16 %v122_v30, %v118_v29  ;;  %v1328_v38 = vsub.f32 %v60_v13, %v118_v29  ;;  %v136_v39 = vand.u32 4294901760, %v71_v27  ;;  %v74_v49 = vld [vmem:[#allocation5 + $0x90] sm:$0xff]  ;;  %v77_v54 = vld [vmem:[#allocation5 + $0xa8] sm:$0xff]  ;;  %v79_v63 = vld [vmem:[#allocation5 + $0xb8] sm:$0xff]  ;;  %s1204_s26 = scalar_lea.vmem %s949_s25, 512 }
  0x3f   :  { %v1330_v43 = vsub.f32 %v62_v14, %v122_v30  ;;  %v1332_v44 = vpack.c.bf16 %v128_v32, %v124_v31  ;;  %v1334_v45 = vsub.f32 %v65_v15, %v124_v31  ;;  %v1336_v46 = vsub.f32 %v67_v19, %v128_v32  ;;  %v76_v1 = vld [vmem:[#allocation5 + $0xa0] sm:$0xff]  ;;  %v78_v6 = vld [vmem:[#allocation5 + $0xb0] sm:$0xff]  ;;  %v81_v7 = vld [vmem:[#allocation5 + $0xc8] sm:$0x7f]  ;;  %p1205_p10 = scmp.ne.s32.totalorder %s949_s25, %s1204_s26  ;;  %p1210_p12 = scmp.lt.s32.totalorder %s1204_s26, %s1204_s26 }
  0x40   :  { %v1338_v50 = vpack.c.bf16 %v130_v34, %v126_v33  ;;  %v1340_v51 = vsub.f32 %v64_v20, %v126_v33  ;;  %v1342_v52 = vsub.f32 %v66_v21, %v130_v34  ;;  %v1344_v53 = vpack.c.bf16 %v136_v39, %v132_v35  ;;  %v80_v8 = vld [vmem:[#allocation5 + $0xc0] sm:$0x7f]  ;;  %v54_v29 = vld [vmem:[#allocation2] sm:$0xff] }
  0x41   :  { %968 = vmatpush1.bf16.msra.mxu1 %v1326_v37  ;;  %1040 = vmatpush1.bf16.msra.mxu0 %v1326_v37  ;;  %v1348_v55 = vsub.f32 %v69_v26, %v132_v35  ;;  %v134_v56 = vand.u32 4294901760, %v68_v40  ;;  %v138_v57 = vand.u32 4294901760, %v70_v41  ;;  %v140_v58 = vand.u32 4294901760, %v73_v42  ;;  %p1211_p13 = por %p1210_p12, %p1209_p11 }
  0x42   :  { %1578 = vst [vmem:[#allocation12_spill] sm:$0xff] %v1338_v50  ;;  %1579 = vst [vmem:[#allocation13_spill] sm:$0xff] %v1344_v53  ;;  %970 = vmatprep.subr.bf16.mxu1 %v1332_v44  ;;  %1042 = vmatprep.subr.bf16.mxu0 %v1332_v44  ;;  %v1352_v59 = vsub.f32 %v71_v27, %v136_v39  ;;  %v144_v60 = vand.u32 4294901760, %v75_v47  ;;  %v142_v61 = vand.u32 4294901760, %v72_v48  ;;  %v146_v62 = vand.u32 4294901760, %v74_v49 }
  0x43   :  { %v1354_v2 = vpack.c.bf16 %v138_v57, %v134_v56  ;;  %v1356_v3 = vsub.f32 %v68_v40, %v134_v56  ;;  %v1358_v4 = vsub.f32 %v70_v41, %v138_v57  ;;  %v148_v5 = vand.u32 4294901760, %v77_v54  ;;  %p1212_p0 = pnand %p1211_p13, %p1205_p10 }
  0x44   :  { %v1360_v9 = vpack.c.bf16 %v144_v60, %v140_v58  ;;  %v1362_v10 = vsub.f32 %v73_v42, %v140_v58  ;;  %v1364_v11 = vsub.f32 %v75_v47, %v144_v60  ;;  %v1366_v12 = vpack.c.bf16 %v146_v62, %v142_v61 }
  0x45   :  { %1580 = vst [vmem:[#allocation14_spill] sm:$0xff] %v1354_v2  ;;  %972 = vmatpush1.bf16.msra.mxu1 %v1338_v50  ;;  %1044 = vmatpush1.bf16.msra.mxu0 %v1338_v50  ;;  %v1370_v13 = vsub.f32 %v72_v48, %v142_v61  ;;  %v1372_v14 = vsub.f32 %v74_v49, %v146_v62  ;;  %v152_v15 = vand.u32 4294901760, %v79_v63  ;;  %v150_v19 = vand.u32 4294901760, %v76_v1 }
  0x46   :  { %1581 = vst [vmem:[#allocation15_spill] sm:$0xff] %v1360_v9  ;;  %1582 = vst [vmem:[#allocation16_spill] sm:$0xff] %v1364_v11  ;;  %974 = vmatprep.subr.bf16.mxu1 %v1344_v53  ;;  %1046 = vmatprep.subr.bf16.mxu0 %v1344_v53  ;;  %v154_v20 = vand.u32 4294901760, %v78_v6  ;;  %v1377_v21 = vsel %vm101_vm0, %v81_v7, 0  ;;  %v103_v26 = vsel %vm101_vm0, %v80_v8, 0  ;;  %v223_v27 = vand.u32 4294901760, %v1304_v17 }
  0x47   :  { %1583 = vst [vmem:[#allocation17_spill] sm:$0xff] %v1366_v12  ;;  %1584 = vst [vmem:[#allocation18_spill] sm:$0xff] %v1370_v13  ;;  %v1381_v30 = vpack.c.bf16 %v152_v15, %v148_v5  ;;  %v1383_v31 = vsub.f32 %v77_v54, %v148_v5  ;;  %v1385_v32 = vsub.f32 %v79_v63, %v152_v15  ;;  %v1392_v35 = vand.u32 4294901760, %v1377_v21 }
  0x48   :  { %v1387_v33 = vsub.f32 %v76_v1, %v150_v19  ;;  %v1389_v34 = vpack.c.bf16 %v154_v20, %v150_v19  ;;  %v1394_v39 = vand.u32 4294901760, %v103_v26  ;;  %v224_v40 = vsub.f32 %v1304_v17, %v223_v27 }
  0x49   :  { %1585 = vst [vmem:[#allocation19_spill] sm:$0xff] %v1381_v30  ;;  %976 = vmatpush1.bf16.msra.mxu1 %v1354_v2  ;;  %1048 = vmatpush1.bf16.msra.mxu0 %v1354_v2  ;;  %v235_v41 = vand.u32 4294901760, %v1306_v18  ;;  %v96_v42 = vsel %vm94_vm1, %v54_v29, 0  ;;  %v229_v47 = vand.u32 4294901760, %v1310_v23  ;;  %v241_v48 = vand.u32 4294901760, %v1312_v24 }
  0x4a   :  { %1586 = vst [vmem:[#allocation20_spill] sm:$0xff] %v1389_v34  ;;  %1587 = vst [vmem:[#allocation21_spill] sm:$0xff] %v1394_v39  ;;  %978 = vmatprep.subr.bf16.mxu1 %v1360_v9  ;;  %1050 = vmatprep.subr.bf16.mxu0 %v1360_v9  ;;  %v1405_v49 = vsub.f32 %v78_v6, %v154_v20  ;;  %v1408_v54 = vsub.f32 %v103_v26, %v1394_v39  ;;  %v1410_v56 = vand.u32 4294901760, %v96_v42  ;;  %vm939_vm2 = vcmask 588800  }
  0x4b   :  { %v247_v57 = vand.u32 4294901760, %v1318_v28  ;;  %v225_v58 = vand.u32 4294901760, %v224_v40  ;;  %v236_v60 = vsub.f32 %v1306_v18, %v235_v41  ;;  %v230_v61 = vsub.f32 %v1310_v23, %v229_v47 }
  0x4c   :  { %v242_v62 = vsub.f32 %v1312_v24, %v241_v48  ;;  %v1057_v63 = vpack.c.bf16 %v235_v41, %v223_v27  ;;  %v1417_v1 = vsub.f32 %v96_v42, %v1410_v56  ;;  %v259_v6 = vand.u32 4294901760, %v1323_v36 }
  0x4d   :  { %v248_v5 = vsub.f32 %v1318_v28, %v247_v57  ;;  %980 = vmatpush1.bf16.msra.mxu1 %v1366_v12  ;;  %1052 = vmatpush1.bf16.msra.mxu0 %v1366_v12  ;;  %v237_v7 = vand.u32 4294901760, %v236_v60  ;;  %v231_v8 = vand.u32 4294901760, %v230_v61  ;;  %v253_v19 = vand.u32 4294901760, %v1328_v38 }
  0x4e   :  { %1588 = vst [vmem:[#allocation22_spill] sm:$0xff] %v1417_v1  ;;  %v243_v15 = vand.u32 4294901760, %v242_v62  ;;  %982 = vmatprep.subr.bf16.mxu1 %v1381_v30  ;;  %1054 = vmatprep.subr.bf16.mxu0 %v1381_v30  ;;  %v201_v20 = vand.u32 4294901760, %v1417_v1  ;;  %v1059_v26 = vpack.c.bf16 %v241_v48, %v229_v47  ;;  %v260_v29 = vsub.f32 %v1323_v36, %v259_v6 }
  0x4f   :  { %v249_v27 = vand.u32 4294901760, %v248_v5  ;;  %v985_v40 = vpack.c.bf16 %v237_v7, %v225_v58  ;;  %v1061_v41 = vpack.c.bf16 %v259_v6, %v247_v57  ;;  %v254_v42 = vsub.f32 %v1328_v38, %v253_v19 }
  0x50   :  { %v265_v60 = vand.u32 4294901760, %v1330_v43  ;;  %v202_v61 = vsub.f32 %v1417_v1, %v201_v20  ;;  %v261_v62 = vand.u32 4294901760, %v260_v29  ;;  %v271_v0 = vand.u32 4294901760, %v1334_v45 }
  0x51   :  { %v283_v12 = vand.u32 4294901760, %v1336_v46  ;;  %984 = vmatpush1.bf16.msra.mxu1 %v1389_v34  ;;  %1056 = vmatpush1.bf16.msra.mxu0 %v1389_v34  ;;  %v987_v47 = vpack.c.bf16 %v243_v15, %v231_v8  ;;  %v255_v48 = vand.u32 4294901760, %v254_v42  ;;  %v277_v57 = vand.u32 4294901760, %v1340_v51 }
  0x52   :  { %v266_v58 = vsub.f32 %v1330_v43, %v265_v60  ;;  %157 = vmatprep.subr.mxu1 %v1392_v35  ;;  %612 = vmatprep.subr.mxu0 %v1392_v35  ;;  %v203_v5 = vand.u32 4294901760, %v202_v61  ;;  %v1063_v6 = vpack.c.bf16 %v265_v60, %v253_v19  ;;  %v272_v7 = vsub.f32 %v1334_v45, %v271_v0 }
  0x53   :  { %v284_v29 = vsub.f32 %v1336_v46, %v283_v12  ;;  %v989_v1 = vpack.c.bf16 %v261_v62, %v249_v27  ;;  %v278_v34 = vsub.f32 %v1340_v51, %v277_v57  ;;  %v289_v8 = vand.u32 4294901760, %v1342_v52 }
  0x54   :  { %v267_v30 = vand.u32 4294901760, %v266_v58  ;;  %v273_v15 = vand.u32 4294901760, %v272_v7  ;;  %v295_v9 = vand.u32 4294901760, %v1348_v55  ;;  %v307_v2 = vand.u32 4294901760, %v1352_v59 }
  0x55   :  { %v285_v42 = vand.u32 4294901760, %v284_v29  ;;  %159 = vmatpush1.msra.mxu1 %v1394_v39  ;;  %614 = vmatpush1.msra.mxu0 %v1394_v39  ;;  %v1065_v60 = vpack.c.bf16 %v283_v12, %v271_v0  ;;  %v290_v61 = vsub.f32 %v1342_v52, %v289_v8  ;;  %v279_v27 = vand.u32 4294901760, %v278_v34 }
  0x56   :  { %v991_v19 = vpack.c.bf16 %v267_v30, %v255_v48  ;;  %986 = vmatprep.subr.bf16.mxu1 %v985_v40  ;;  %1058 = vmatprep.subr.bf16.mxu0 %v1057_v63  ;;  %v296_v62 = vsub.f32 %v1348_v55, %v295_v9  ;;  %v308_v58 = vsub.f32 %v1352_v59, %v307_v2  ;;  %v301_v7 = vand.u32 4294901760, %v1356_v3 }
  0x57   :  { %204 = vmatmul.mubr.f32.vlgmr.msra.gmra.mrb[0].mxu1 %v203_v5  ;;  %657 = vmatmul.mubr.f32.vlgmr.msra.gmra.mrb[0].mxu0 %v201_v20  ;;  %v291_v29 = vand.u32 4294901760, %v290_v61  ;;  %v1067_v53 = vpack.c.bf16 %v289_v8, %v277_v57  ;;  %v313_v50 = vand.u32 4294901760, %v1358_v4  ;;  %v319_v30 = vand.u32 4294901760, %v1362_v10 }
  0x58   :  { %988 = vmatpush1.bf16.msra.mxu1 %v987_v47  ;;  %1060 = vmatpush1.bf16.msra.mxu0 %v1059_v26  ;;  %v993_v0 = vpack.c.bf16 %v285_v42, %v273_v15  ;;  %v1069_v12 = vpack.c.bf16 %v307_v2, %v295_v9  ;;  %v302_v34 = vsub.f32 %v1356_v3, %v301_v7  ;;  %v331_v63 = vand.u32 4294901760, %v1364_v11 }
  0x59   :  { %990 = vmatprep.subr.bf16.mxu1 %v989_v1  ;;  %1062 = vmatprep.subr.bf16.mxu0 %v1061_v41  ;;  %v297_v40 = vand.u32 4294901760, %v296_v62  ;;  %v309_v48 = vand.u32 4294901760, %v308_v58  ;;  %v314_v20 = vsub.f32 %v1358_v4, %v313_v50  ;;  %v325_v57 = vand.u32 4294901760, %v1370_v13  ;;  %v55_v62 = vld [vmem:[#allocation2 + $0x8] sm:$0xff] }
  0x5a   :  { %v995_v5 = vpack.c.bf16 %v291_v29, %v279_v27  ;;  %v320_v8 = vsub.f32 %v1362_v10, %v319_v30  ;;  %v332_v47 = vsub.f32 %v1364_v11, %v331_v63  ;;  %v1589_v26 = vmov 0.0  }
  0x5b   :  { %209 = vmatprep.mubr.f32.mxu1 %v1589_v26  ;;  %662 = vmatprep.mubr.f32.mxu0 %v1589_v26  ;;  %v303_v2 = vand.u32 4294901760, %v302_v34  ;;  %v315_v9 = vand.u32 4294901760, %v314_v20  ;;  %v326_v1 = vsub.f32 %v1370_v13, %v325_v57  ;;  %v337_v41 = vand.u32 4294901760, %v1372_v14 }
  0x5c   :  { %992 = vmatpush1.bf16.msra.mxu1 %v991_v19  ;;  %1064 = vmatpush1.bf16.msra.mxu0 %v1063_v6  ;;  %v321_v15 = vand.u32 4294901760, %v320_v8  ;;  %v333_v42 = vand.u32 4294901760, %v332_v47  ;;  %v343_v61 = vand.u32 4294901760, %v1383_v31  ;;  %v355_v27 = vand.u32 4294901760, %v1385_v32 }
  0x5d   :  { %994 = vmatprep.subr.bf16.mxu1 %v993_v0  ;;  %1066 = vmatprep.subr.bf16.mxu0 %v1065_v60  ;;  %v997_v58 = vpack.c.bf16 %v309_v48, %v297_v40  ;;  %v1071_v29 = vpack.c.bf16 %v313_v50, %v301_v7  ;;  %v338_v34 = vsub.f32 %v1372_v14, %v337_v41  ;;  %v327_v39 = vand.u32 4294901760, %v326_v1 }
  0x5e   :  { %v1073_v20 = vpack.c.bf16 %v331_v63, %v319_v30  ;;  %v344_v13 = vsub.f32 %v1383_v31, %v343_v61  ;;  %v356_v19 = vsub.f32 %v1385_v32, %v355_v27  ;;  %v349_v8 = vand.u32 4294901760, %v1387_v33 }
  0x5f   :  { %v339_v6 = vand.u32 4294901760, %v338_v34  ;;  %v361_v47 = vand.u32 4294901760, %v1405_v49  ;;  %v99_v11 = vsel %vm94_vm1, %v55_v62, 0  ;;  %v999_v60 = vpack.c.bf16 %v315_v9, %v303_v2 }
  0x60   :  { %996 = vmatpush1.bf16.msra.mxu1 %v995_v5  ;;  %1068 = vmatpush1.bf16.msra.mxu0 %v1067_v53  ;;  %v1001_v0 = vpack.c.bf16 %v333_v42, %v321_v15  ;;  %v1471_v50 = vand.u32 4294901760, %v99_v11  ;;  %v1475_v7 = vsub.f32 %v1377_v21, %v1392_v35  ;;  %v345_v30 = vand.u32 4294901760, %v344_v13 }
  0x61   :  { %998 = vmatprep.subr.bf16.mxu1 %v997_v58  ;;  %1070 = vmatprep.subr.bf16.mxu0 %v1069_v12  ;;  %v357_v63 = vand.u32 4294901760, %v356_v19  ;;  %v350_v40 = vsub.f32 %v1387_v33, %v349_v8  ;;  %v362_v48 = vsub.f32 %v1405_v49, %v361_v47  ;;  %v1003_v5 = vpack.c.bf16 %v339_v6, %v327_v39 }
  0x62   :  { %v1480_v1 = vsub.f32 %v99_v11, %v1471_v50  ;;  %v367_v53 = vand.u32 4294901760, %v1475_v7  ;;  %v1075_v2 = vpack.c.bf16 %v337_v41, %v325_v57  ;;  %v373_v13 = vand.u32 4294901760, %v1408_v54 }
  0x63   :  { %v351_v9 = vand.u32 4294901760, %v350_v40  ;;  %v363_v21 = vand.u32 4294901760, %v362_v48  ;;  %v1005_v12 = vpack.c.bf16 %v357_v63, %v345_v30  ;;  %v1077_v42 = vpack.c.bf16 %v355_v27, %v343_v61 }
  0x64   :  { %1000 = vmatpush1.bf16.msra.mxu1 %v999_v60  ;;  %1072 = vmatpush1.bf16.msra.mxu0 %v1071_v29  ;;  %v212_v15 = vand.u32 4294901760, %v1480_v1  ;;  %v368_v62 = vsub.f32 %v1475_v7, %v367_v53  ;;  %v1079_v57 = vpack.c.bf16 %v361_v47, %v349_v8  ;;  %v374_v58 = vsub.f32 %v1408_v54, %v373_v13 }
  0x65   :  { %1002 = vmatprep.subr.bf16.mxu1 %v1001_v0  ;;  %1074 = vmatprep.subr.bf16.mxu0 %v1073_v20  ;;  %v1007_v39 = vpack.c.bf16 %v363_v21, %v351_v9  ;;  %v1009_v27 = vpack.c.bf16 %v1306_v18, %v1304_v17  ;;  %v1011_v34 = vpack.c.bf16 %v1312_v24, %v1310_v23  ;;  %v1590_v23 = vld [vmem:[#allocation12_spill] sm:$0xff] }
  0x66   :  { %v213_v11 = vsub.f32 %v1480_v1, %v212_v15  ;;  %666 = vmatmul.mubr.f32.gmra.mrb[2].mxu0 %v212_v15  ;;  %v369_v29 = vand.u32 4294901760, %v368_v62  ;;  %v375_v61 = vand.u32 4294901760, %v374_v58  ;;  %v1013_v20 = vpack.c.bf16 %v1323_v36, %v1318_v28  ;;  %v1592_v28 = vld [vmem:[#allocation16_spill] sm:$0xff] }
  0x67   :  { %814 = vmatprep.mubr.f32.mxu0 %v1589_v26  ;;  %v1015_v17 = vpack.c.bf16 %v1330_v43, %v1328_v38  ;;  %v1017_v18 = vpack.c.bf16 %v1336_v46, %v1334_v45  ;;  %v1023_v24 = vpack.c.bf16 %v1358_v4, %v1356_v3  ;;  %v1025_v36 = vpack.c.bf16 %v1592_v28, %v1362_v10  ;;  %v1594_v38 = vld [vmem:[#allocation18_spill] sm:$0xff]  ;;  %v1596_v46 = vld [vmem:[#allocation17_spill] sm:$0xff] }
  0x68   :  { %1004 = vmatpush1.bf16.msra.mxu1 %v1003_v5  ;;  %1076 = vmatpush1.bf16.msra.mxu0 %v1075_v2  ;;  %v214_v41 = vand.u32 4294901760, %v213_v11  ;;  %v1027_v43 = vpack.c.bf16 %v1372_v14, %v1594_v38  ;;  %v1029_v45 = vpack.c.bf16 %v1385_v32, %v1383_v31  ;;  %v1600_v3 = vld [vmem:[#allocation22_spill] sm:$0xff]  ;;  %v84_v4 = vlaneseq  ;;  %v82_v31 = vld [vmem:[#allocation7] sm:$0x3] }
  0x69   :  { %1006 = vmatprep.subr.bf16.mxu1 %v1005_v12  ;;  %1078 = vmatprep.subr.bf16.mxu0 %v1077_v42 }
  0x6a   :  { %215 = vmatmul.mubr.f32.gmra.mrb[2].mxu1 %v214_v41  ;;  %v85_v10 = vshrl.u32 %v84_v4, 7 }
  0x6b   :  { %415 = vmatprep.mubr.f32.mxu1 %v1589_v26 }
  0x6c   :  { %1008 = vmatpush1.bf16.msra.mxu1 %v1007_v39  ;;  %1080 = vmatpush1.bf16.msra.mxu0 %v1079_v57  ;;  %v86_v14 = vsub.s32 0, %v85_v10  ;;  %v90_v32 = vsub.s32 1, %v85_v10 }
  0x6d   :  { %370 = vmatprep.subr.mxu1 %v369_v29  ;;  %771 = vmatprep.subr.mxu0 %v367_v53 }
  0x70   :  { %376 = vmatpush1.msra.mxu1 %v375_v61  ;;  %775 = vmatpush1.msra.mxu0 %v373_v13 }
  0x71   :  { %1010 = vmatprep.subr.bf16.mxu1 %v1009_v27  ;;  %1082 = vmatprep.subr.bf16.mxu0 %v1302_v16  ;;  %v1019_v16 = vpack.c.bf16 %v1342_v52, %v1340_v51  ;;  %v1031_v51 = vpack.c.bf16 %v1405_v49, %v1387_v33  ;;  %v1597_v52 = vld [vmem:[#allocation19_spill] sm:$0xff]  ;;  %v87_v33 = vrot.slane %v82_v31, %v86_v14 }
  0x72   :  { %417 = vmatmul.mubr.f32.vlgmr.msra.gmra.mrb[0].mxu1 %v1410_v56  ;;  %816 = vmatmul.mubr.f32.vlgmr.msra.gmra.mrb[0].mxu0 %v1410_v56 }
  0x73   :  { %1012 = vmatpush1.bf16.msra.mxu1 %v1011_v34  ;;  %1084 = vmatpush1.bf16.msra.mxu0 %v1308_v22  ;;  %v1021_v22 = vpack.c.bf16 %v1352_v59, %v1348_v55  ;;  %v1598_v55 = vld [vmem:[#allocation20_spill] sm:$0xff]  ;;  %v1599_v59 = vld [vmem:[#allocation21_spill] sm:$0xff] }
  0x74   :  { %1014 = vmatprep.subr.bf16.mxu1 %v1013_v20  ;;  %1086 = vmatprep.subr.bf16.mxu0 %v1314_v25  ;;  %v1591_v25 = vld [vmem:[#allocation13_spill] sm:$0xff] }
  0x75   :  { %422 = vmatprep.mubr.f32.mxu1 %v1589_v26  ;;  %821 = vmatprep.mubr.f32.mxu0 %v1589_v26 }
  0x76   :  { %424 = vmatmul.mubr.f32.gmra.mrb[2].mxu1 %v1471_v50  ;;  %823 = vmatmul.mubr.f32.gmra.mrb[2].mxu0 %v1471_v50 }
  0x77   :  { %1016 = vmatpush1.bf16.msra.mxu1 %v1015_v17  ;;  %1088 = vmatpush1.bf16.msra.mxu0 %v1326_v37  ;;  %v1593_v37 = vld [vmem:[#allocation14_spill] sm:$0xff] }
  0x78   :  { %1018 = vmatprep.subr.bf16.mxu1 %v1017_v18  ;;  %1090 = vmatprep.subr.bf16.mxu0 %v1332_v44  ;;  %v1595_v44 = vld [vmem:[#allocation15_spill] sm:$0xff] }
  0x79   :  { %546 = vmatprep.mubr.f32.mxu1 %v1589_v26  ;;  %919 = vmatprep.mubr.f32.mxu0 %v1589_v26 }
  0x7b   :  { %1020 = vmatpush1.bf16.msra.mxu1 %v1019_v16  ;;  %1092 = vmatpush1.bf16.msra.mxu0 %v1590_v23 }
  0x7c   :  { %1022 = vmatprep.subr.bf16.mxu1 %v1021_v22  ;;  %1094 = vmatprep.subr.bf16.mxu0 %v1591_v25 }
  0x7f   :  { %1024 = vmatpush1.bf16.msra.mxu1 %v1023_v24  ;;  %1096 = vmatpush1.bf16.msra.mxu0 %v1593_v37 }
  0x80   :  { %1026 = vmatprep.subr.bf16.mxu1 %v1025_v36  ;;  %1098 = vmatprep.subr.bf16.mxu0 %v1595_v44 }
  0x83   :  { %1028 = vmatpush1.bf16.msra.mxu1 %v1027_v43  ;;  %1100 = vmatpush1.bf16.msra.mxu0 %v1596_v46 }
  0x84   :  { %1030 = vmatprep.subr.bf16.mxu1 %v1029_v45  ;;  %1102 = vmatprep.subr.bf16.mxu0 %v1597_v52 }
  0x87   :  { %1032 = vmatpush1.bf16.msra.mxu1 %v1031_v51  ;;  %1104 = vmatpush1.bf16.msra.mxu0 %v1598_v55 }
  0x88   :  { %504 = vmatprep.subr.mxu1 %v1475_v7  ;;  %878 = vmatprep.subr.mxu0 %v1392_v35  ;;  %v91_v35 = vrot.slane %v82_v31, %v90_v32 }
  0x8b   :  { %507 = vmatpush1.msra.mxu1 %v1408_v54  ;;  %880 = vmatpush1.msra.mxu0 %v1599_v59 }
  0x8c   :  { %549 = vmatmul.mubr.f32.vlgmr.msra.gmra.mrb[0].mxu1 %v1600_v3  ;;  %921 = vmatmul.mubr.f32.vlgmr.msra.gmra.mrb[0].mxu0 %v1410_v56 }
  0x8d   :  { %554 = vmatprep.mubr.f32.mxu1 %v1589_v26  ;;  %926 = vmatprep.mubr.f32.mxu0 %v1589_v26 }
  0x90   :  { %557 = vmatmul.mubr.f32.gmra.mrb[2].mxu1 %v1480_v1  ;;  %928 = vmatmul.mubr.f32.gmra.mrb[2].mxu0 %v1471_v50 }
 0x15f   :  { %v550_v49 = vpop.f32.mrb[0].mxu1  ;;  %v922_v54 = vpop.f32.mrb[0].mxu0 }
 0x160   :  { %v1105_v19 = vadd.f32 %v550_v49, %v87_v33  ;;  %v552_v6 = vpop.f32.mrb[1].mxu1  ;;  %v924_v56 = vpop.f32.mrb[1].mxu0 }
 0x161   :  { %v1107_v8 = vadd.f32 %v552_v6, %v91_v35 }
 0x162   :  { %v1106_v47 = vadd.f32 %v1105_v19, %v922_v54 }
 0x163   :  { %v1108_v60 = vadd.f32 %v1107_v8, %v924_v56  ;;  %v558_v26 = vpop.f32.mrb[2].mxu1  ;;  %v929_v0 = vpop.f32.mrb[2].mxu0 }
 0x164   :  { %v934_v7 = vmax.f32 %v1106_v47, 0.0  ;;  %v1109_v50 = vadd.f32 %v558_v26, %v87_v33  ;;  %v560_v30 = vpop.f32.mrb[3].mxu1  ;;  %v931_v63 = vpop.f32.mrb[3].mxu0 }
 0x165   :  { %v935_v40 = vmax.f32 %v1108_v60, 0.0  ;;  %v1111_v48 = vadd.f32 %v560_v30, %v91_v35 }
 0x166   :  { %938 = vst [vmem:[#allocation8] sm:$0xff] %v934_v7  ;;  %v1110_v1 = vadd.f32 %v1109_v50, %v929_v0 }
 0x167   :  { %940 = vst.msk [vmem:[#allocation8 + $0x8] sm:$0xff] %vm939_vm2, %v935_v40  ;;  %v1112_v53 = vadd.f32 %v1111_v48, %v931_v63 }
 0x168   :  { %v936_v5 = vmax.f32 %v1110_v1, 0.0 }
 0x169   :  { %v937_v2 = vmax.f32 %v1112_v53, 0.0 }
 0x16a   :  { %941 = vst [vmem:[#allocation8 + $0x10] sm:$0xff] %v936_v5 }
 0x16b   :  { %942 = vst.msk [vmem:[#allocation8 + $0x18] sm:$0xff] %vm939_vm2, %v937_v2 }
 0x16c   :  { %1215 = shalt.err (!%p1212_p0)
}
 0x16d   :  { %s1216_s29 = scalar_lea.hbm %s1564_s3, 512 }
 0x16e   :  { %p1217_p1 = scmp.ne.s32.totalorder %s1564_s3, %s1216_s29  ;;  %p1220_p2 = scmp.lt.u32.totalorder %s1216_s29, %s1564_s3 }
 0x170   :  { %p1222_p3 = pnand %p1220_p2, %p1217_p1 }
 0x172   :  { %1225 = shalt.err (!%p1222_p3)
}
 0x173   :  { %954 = dma.vmem_to_hbm [thread:$0]  %s949_s25, 512, %s1564_s3, [#allocation4], %s1233_s22, %s1233_s22, %s1234_s23  }
 0x174   :  { %1230 = dma.done.wait [#allocation4], 512  }
 0x175   :  { %1231 = vsyncadd [#allocation4], 4294966784 }
 0x176   :  { %958 = vsyncpa [#allocation3], 1 }
 0x177   :  { %959 = vsyncpa [#allocation6], 1 }
 0x178   :  { %960 = vsyncpa [#allocation4], 1 }

</bundles_post_ra>
